<compile_context>
chip_gen: v7x
topology: tpu7x:2x2x1
jax: 0.10.0
libtpu: 0.0.40
codegen_flags: <defaults>
</compile_context>

<pallas_src>
import functools

import jax
import jax.numpy as jnp
from jax.experimental import pallas as pl
from jax.experimental.pallas import tpu as pltpu

_LANES = 128
_DEFAULT_MAX_PANEL_BYTES = 24 * 1024 * 1024  # VMEM budget for the full-K path


def _round_up(v, m):
    return (v + m - 1) // m * m


def _plan_tiles(n):
    """Pick (tm, n_pad): output-row tile (128-multiple, 256-aligned where it
    matters for the v6e/v7x MXU) and padded node count (multiple of tm)."""
    n128 = _round_up(n, _LANES)
    if n128 >= 1024:
        tm = 512
    elif n128 > 256:
        tm = 256
    elif n128 == 256:
        tm = 128          # 2 row tiles instead of 1 -> both v7x TCs get work
    else:
        tm = 128
    n_pad = _round_up(n128, tm)
    return tm, n_pad


def _gcn_kernel_full_k(a_ref, x_ref, o_ref):
    # Whole contraction in one MXU call: no accumulator scratch, no branches.
    out = jnp.dot(a_ref[...], x_ref[...], preferred_element_type=jnp.float32)
    o_ref[...] = jnp.maximum(out, 0.0).astype(o_ref.dtype)


def _make_tiled_kernel(tk):
    def kernel(a_ref, x_ref, o_ref, acc_ref):
        # grid = (rows, K); K is last so the f32 accumulator carries across it.
        k = pl.program_id(1)

        @pl.when(k == 0)
        def _():
            acc_ref[...] = jnp.zeros_like(acc_ref)

        # x is VMEM-resident (DMA'd once); slice the current K block in-kernel.
        start = pl.multiple_of(k * tk, tk)
        x_blk = x_ref[pl.ds(start, tk), :]
        acc_ref[...] += jnp.dot(a_ref[...], x_blk,
                                preferred_element_type=jnp.float32)

        @pl.when(k == pl.num_programs(1) - 1)
        def _():
            o_ref[...] = jnp.maximum(acc_ref[...], 0.0).astype(o_ref.dtype)

    return kernel


@functools.partial(jax.jit, static_argnames=("max_panel_bytes",))
def gcn_forward(x, edge_index, *, max_panel_bytes=_DEFAULT_MAX_PANEL_BYTES):
    """Matches GCN.forward(x, edge_index) from Dual-AMN/src/gcn_layer.py."""
    edge_index = edge_index.astype(jnp.int32)
    edge_index_j, edge_index_i = edge_index[0], edge_index[1]
    n, h = x.shape
    out_dtype = x.dtype

    # degree(edge_index_i, N) and symmetric normalization, computed in f32.
    ones = jnp.ones_like(edge_index_i, dtype=jnp.float32)
    deg = jnp.zeros((n,), jnp.float32).at[edge_index_i].add(ones)
    # Guard isolated nodes: deg**-0.5 would give inf -> NaN rows in A.
    deg_inv_sqrt = jnp.where(deg > 0, deg ** -0.5, 0.0)
    norm = deg_inv_sqrt[edge_index_j] * deg_inv_sqrt[edge_index_i]

    tm, n_pad = _plan_tiles(n)
    h_pad = _round_up(h, _LANES)

    # Scatter the normalized adjacency directly into bf16 (no f32 intermediate
    # + cast pass); the kernel accumulates in f32 on the MXU.
    # TODO(synk): replace the dense O(N^2) adjacency with a block-sparse CSR
    # SpMM via PrefetchScalarGridSpec scalar prefetch so traffic scales with E.
    a = jnp.zeros((n_pad, n_pad), jnp.bfloat16)
    a = a.at[edge_index_i, edge_index_j].add(norm.astype(jnp.bfloat16))

    x_pad = jnp.zeros((n_pad, h_pad), jnp.bfloat16)
    x_pad = x_pad.at[:n, :h].set(x.astype(jnp.bfloat16))

    rows = n_pad // tm
    out_itemsize = jnp.dtype(out_dtype).itemsize

    # Full-K path if the double-buffered bf16 A row panel + resident x +
    # double-buffered output tile fit the budget; otherwise tile K as well.
    panel_bytes = (2 * tm * n_pad * 2 + 2 * n_pad * h_pad * 2
                   + 2 * tm * h_pad * out_itemsize)
    full_k = panel_bytes <= max_panel_bytes

    if full_k:
        grid = (rows,)
        kernel = _gcn_kernel_full_k
        in_specs = [
            pl.BlockSpec((tm, n_pad), lambda i: (i, 0)),        # A row panel
            pl.BlockSpec((n_pad, h_pad), lambda i: (0, 0)),     # resident x
        ]
        out_specs = pl.BlockSpec((tm, h_pad), lambda i: (i, 0))
        scratch_shapes = []
        dims = ("parallel",)
        vmem_est = panel_bytes
    else:
        tk = tm                                                 # divides n_pad
        grid = (rows, n_pad // tk)
        kernel = _make_tiled_kernel(tk)
        in_specs = [
            pl.BlockSpec((tm, tk), lambda i, k: (i, k)),        # A tile
            pl.BlockSpec((n_pad, h_pad), lambda i, k: (0, 0)),  # resident x
        ]
        out_specs = pl.BlockSpec((tm, h_pad), lambda i, k: (i, 0))
        scratch_shapes = [pltpu.VMEM((tm, h_pad), jnp.float32)]
        dims = ("parallel", "arbitrary")
        vmem_est = (2 * tm * tk * 2 + 2 * n_pad * h_pad * 2
                    + tm * h_pad * 4 + 2 * tm * h_pad * out_itemsize)

    # Explicit scoped-VMEM budget: above the 16/32 MiB defaults, but capped so
    # it stays inside even v7x's 64 MiB physical VMEM.
    vmem_limit = int(min(max(2 * vmem_est, 32 * 1024 * 1024), 64 * 1024 * 1024))

    out = pl.pallas_call(
        kernel,
        out_shape=jax.ShapeDtypeStruct((n_pad, h_pad), out_dtype),
        grid_spec=pltpu.PrefetchScalarGridSpec(
            num_scalar_prefetch=0,
            grid=grid,
            in_specs=in_specs,
            out_specs=out_specs,
            scratch_shapes=scratch_shapes,
        ),
        compiler_params=pltpu.CompilerParams(
            dimension_semantics=dims,
            vmem_limit_bytes=vmem_limit),
    )(a, x_pad)

    return out[:n, :h]


def _reference(x, edge_index, quantize=False):
    """Pure-JAX reference of the PyTorch module. With quantize=True it follows
    the kernel's bf16 streaming path (bf16 scatter-add of A, bf16 x) exactly."""
    edge_index = edge_index.astype(jnp.int32)
    j, i = edge_index[0], edge_index[1]
    n = x.shape[0]
    deg = jnp.zeros((n,), jnp.float32).at[i].add(
        jnp.ones_like(i, dtype=jnp.float32))
    dis = jnp.where(deg > 0, deg ** -0.5, 0.0)
    norm = dis[j] * dis[i]
    if quantize:
        a = jnp.zeros((n, n), jnp.bfloat16)
        a = a.at[i, j].add(norm.astype(jnp.bfloat16)).astype(jnp.float32)
        xx = x.astype(jnp.bfloat16).astype(jnp.float32)
    else:
        a = jnp.zeros((n, n), jnp.float32).at[i, j].add(norm)
        xx = x.astype(jnp.float32)
    out = jnp.dot(a, xx, preferred_element_type=jnp.float32)
    return jax.nn.relu(out).astype(x.dtype)


def _make_graph(key, n, h, e_extra):
    k_x, k_src = jax.random.split(key)
    x = jax.random.normal(k_x, (n, h), dtype=jnp.float32)
    self_loops = jnp.arange(n, dtype=jnp.int32)
    extra_src = jax.random.randint(k_src, (e_extra,), 0, n, dtype=jnp.int32)
    extra_dst = jax.random.randint(
        jax.random.fold_in(k_src, 1), (e_extra,), 0, n, dtype=jnp.int32)
    edge_j = jnp.concatenate([self_loops, extra_src])   # source nodes
    edge_i = jnp.concatenate([self_loops, extra_dst])   # target nodes
    edge_index = jnp.stack([edge_j, edge_i], axis=0)    # [2, E]
    return x, edge_index


def _check(out, x, edge_index):
    assert out.shape == x.shape and out.dtype == x.dtype
    ref_q = _reference(x, edge_index, quantize=True)   # same bf16 path
    assert jnp.allclose(out, ref_q, atol=2e-3, rtol=2e-3), \
        "mismatch vs bf16-quantized reference"
    ref = _reference(x, edge_index, quantize=False)    # module semantics
    assert jnp.allclose(out, ref, atol=1e-1, rtol=1e-1), \
        "mismatch vs f32 reference"


if __name__ == "__main__":
    key = jax.random.PRNGKey(0)

    # Case 1 (default path): small graph, non-multiple-of-128 N -> padding,
    # full-K row-panel kernel with 2 row tiles.
    x1, ei1 = _make_graph(jax.random.fold_in(key, 0), n=200, h=32, e_extra=400)
    out1 = gcn_forward(x1, ei1, max_panel_bytes=_DEFAULT_MAX_PANEL_BYTES)
    jax.block_until_ready(out1)
    _check(out1, x1, ei1)

    # Case 2: force the tiled-K accumulator path (resident x + dynamic K slice)
    # by shrinking the full-K panel budget to zero.
    x2, ei2 = _make_graph(jax.random.fold_in(key, 1), n=600, h=32, e_extra=1200)
    out2 = gcn_forward(x2, ei2, max_panel_bytes=0)
    jax.block_until_ready(out2)
    _check(out2, x2, ei2)

    print("KERNEL_OK")
</pallas_src>

<mosaic_0001>
module attributes {stable_mosaic.version = 11 : i64} {
  func.func @_gcn_kernel_full_k(%arg0: i32, %arg1: memref<128x256xbf16, #tpu.memory_space<vmem>>, %arg2: memref<256x128xbf16, #tpu.memory_space<vmem>>, %arg3: memref<128x128xf32, #tpu.memory_space<vmem>>) attributes {dimension_semantics = [#tpu.dimension_semantics<parallel>], iteration_bounds = array<i64: 2>, scalar_prefetch = 0 : i64, scratch_operands = 0 : i64, tpu.core_type = #tpu.core_type<tc>, window_params = [{transform_indices = @transform_0, window_bounds = array<i64: 128, 256>}, {pipeline_mode = #tpu.pipeline_mode<synchronous>, transform_indices = @transform_1, window_bounds = array<i64: 256, 128>}, {transform_indices = @transform_2, window_bounds = array<i64: 128, 128>}]} {
    %c0 = arith.constant 0 : index
    %c0_0 = arith.constant 0 : index
    %0 = vector.load %arg1[%c0, %c0_0] : memref<128x256xbf16, #tpu.memory_space<vmem>>, vector<128x256xbf16>
    %c0_1 = arith.constant 0 : index
    %c0_2 = arith.constant 0 : index
    %1 = vector.load %arg2[%c0_1, %c0_2] : memref<256x128xbf16, #tpu.memory_space<vmem>>, vector<256x128xbf16>
    %cst = arith.constant dense<0.000000e+00> : vector<128x128xf32>
    %2 = tpu.matmul %0, %1, %cst {dimension_numbers = #tpu.dot_dimension_numbers<[1], [0], [0], [1], [0, 0, 1, 1], [], []>} : vector<128x256xbf16>, vector<256x128xbf16>, vector<128x128xf32> -> vector<128x128xf32>
    %cst_3 = arith.constant 0.000000e+00 : f32
    %3 = vector.broadcast %cst_3 : f32 to vector<128x128xf32>
    %4 = arith.maximumf %2, %3 : vector<128x128xf32>
    %c0_4 = arith.constant 0 : index
    %c0_5 = arith.constant 0 : index
    %5 = vector.load %arg3[%c0_4, %c0_5] : memref<128x128xf32, #tpu.memory_space<vmem>>, vector<128x128xf32>
    tpu.vector_store %arg3[%c0_4, %c0_5], %4 {strides = array<i32>} : memref<128x128xf32, #tpu.memory_space<vmem>>, vector<128x128xf32>,
    return
  }
  func.func @transform_0(%arg0: i32) -> (i32, i32) {
    %c0_i32 = arith.constant 0 : i32
    %c0_i32_0 = arith.constant 0 : i32
    return %arg0, %c0_i32 : i32, i32
  }
  func.func @transform_1(%arg0: i32) -> (i32, i32) {
    %c0_i32 = arith.constant 0 : i32
    %c0_i32_0 = arith.constant 0 : i32
    %c0_i32_1 = arith.constant 0 : i32
    return %c0_i32, %c0_i32_0 : i32, i32
  }
  func.func @transform_2(%arg0: i32) -> (i32, i32) {
    %c0_i32 = arith.constant 0 : i32
    %c0_i32_0 = arith.constant 0 : i32
    return %arg0, %c0_i32 : i32, i32
  }
}

</mosaic_0001>

<bundles_post_ra>
// kernel: gcn_forward.1
= control target key start
LH: loop header
LB: loop body
LE: loop exit
PB: predicated region body
PF: predicated region fallthrough
CT: control target
= control target key end

     0   :  { %s756_s9 = smov 0   ;;  %s864_s0 = inlined_call_operand.vmem [shape: bf16[256,256], index: 0, kind: input, shape index: {}]   ;;  %s865_s1 = inlined_call_operand.vmem [shape: bf16[256,128], index: 1, kind: input, shape index: {}]   ;;  %s866_s2 = inlined_call_operand.vmem [shape: f32[256,128], index: 2, kind: output, shape index: {}]  }
   0x1 LB: > { %s560_s10 = sadd.s32 4294967295, %s739_s9   ;;  %p564_p0 = scmp.ge.s32.totalorder %s739_s9, 1  ;;  %s739_s9 = sphi %s756_s9, %s12_s9  }
   0x2   : > { %p114_p1 = scmp.lt.s32.totalorder %s739_s9, 3 }
   0x4   : > { %p115_p2 = pnand %p564_p0, %p114_p1 }
   0x5   : > { %v693_v0 = vld [vmem:[%s865_s1 + $0x40] sm:$0xff] (!%p115_p2)   ;;  %s565_s13 = sshll.u32 (!%p115_p2), %s560_s10, 4  ;;  %v695_v2 = vld [vmem:[%s865_s1 + $0x48] sm:$0xff] (!%p115_p2)   ;;  %v697_v4 = vld [vmem:[%s865_s1 + $0x50] sm:$0xff] (!%p115_p2)  }
   0x6   : > { %118 = sbr.rel (%p115_p2) target bundleno = 282 (0x11a), region = 28  ;;  %v694_v1 = vld [vmem:[%s865_s1] sm:$0xff] (!%p115_p2)   ;;  %605 = vmatprep.subr.bf16.mxu0 (!%p115_p2), %v693_v0  ;;  %669 = vmatprep.subr.bf16.mxu1 (!%p115_p2), %v693_v0  ;;  %v696_v3 = vld [vmem:[%s865_s1 + $0x8] sm:$0xff] (!%p115_p2)   ;;  %p138_p3 = scmp.lt.s32.totalorder (!%p115_p2), %s565_s13, 31  ;;  %v698_v5 = vld [vmem:[%s865_s1 + $0x10] sm:$0xff] (!%p115_p2)  }
   0x7   : > { %606 = vmatpush3.bf16.msra.mxu0 (!%p115_p2), %v694_v1  ;;  %677 = vmatpush3.bf16.msra.mxu1 (!%p115_p2), %v694_v1  ;;  %v699_v6 = vld [vmem:[%s865_s1 + $0x58] sm:$0xff] (!%p115_p2)   ;;  %v701_v8 = vld [vmem:[%s865_s1 + $0x60] sm:$0xff] (!%p115_p2)   ;;  %v703_v10 = vld [vmem:[%s865_s1 + $0x68] sm:$0xff] (!%p115_p2)  }
   0x8   : > { %607 = vmatprep.subr.bf16.mxu0 (!%p115_p2), %v695_v2  ;;  %670 = vmatprep.subr.bf16.mxu1 (!%p115_p2), %v695_v2  ;;  %v700_v7 = vld [vmem:[%s865_s1 + $0x18] sm:$0xff] (!%p115_p2)   ;;  %v702_v9 = vld [vmem:[%s865_s1 + $0x20] sm:$0xff] (!%p115_p2)   ;;  %v704_v13 = vld [vmem:[%s865_s1 + $0x28] sm:$0xff] (!%p115_p2)  }
   0x9   : > { %v705_v14 = vld [vmem:[%s865_s1 + $0x70] sm:$0xff] (!%p115_p2)   ;;  %v707_v16 = vld [vmem:[%s865_s1 + $0x78] sm:$0xff] (!%p115_p2)  }
   0xa   : > { %v706_v15 = vld [vmem:[%s865_s1 + $0x30] sm:$0xff] (!%p115_p2)   ;;  %v708_v17 = vld [vmem:[%s865_s1 + $0x38] sm:$0xff] (!%p115_p2)  }
   0xb   : > { %608 = vmatpush3.bf16.msra.mxu0 (!%p115_p2), %v696_v3  ;;  %678 = vmatpush3.bf16.msra.mxu1 (!%p115_p2), %v696_v3 }
   0xc   : > { %609 = vmatprep.subr.bf16.mxu0 (!%p115_p2), %v697_v4  ;;  %671 = vmatprep.subr.bf16.mxu1 (!%p115_p2), %v697_v4 }
   0xd   : > { %s868_s13 = smov (!%p138_p3, %s565_s13), 31 }
   0xe   : > { %s604_s28 = sshll.u32 %s868_s13, 3 }
   0xf   : > { %610 = vmatpush3.bf16.msra.mxu0 %v698_v5  ;;  %679 = vmatpush3.bf16.msra.mxu1 %v698_v5  ;;  %s799_s5 = scalar_lea.vmem %s864_s0, %s604_s28  ;;  %s843_s24 = scalar_lea.vmem %s866_s2, %s604_s28 }
  0x10   : > { %611 = vmatprep.subr.bf16.mxu0 %v699_v6  ;;  %672 = vmatprep.subr.bf16.mxu1 %v699_v6  ;;  %v711_v11 = vld [vmem:[%s799_s5 + $0x4] ss:$8 sps:$4 sm:$0xff]   ;;  %v709_v18 = vld [vmem:[%s799_s5] ss:$8 sps:$4 sm:$0xff]   ;;  %v715_v20 = vld [vmem:[%s799_s5 + $0x14] ss:$8 sps:$4 sm:$0xff]  }
  0x11   : > { %v714_v12 = vld [vmem:[%s799_s5 + $0x44] ss:$8 sps:$4 sm:$0xff]   ;;  %407 = vmatprep.mubr.bf16.mxu0 %v711_v11  ;;  %v712_v19 = vld [vmem:[%s799_s5 + $0x40] ss:$8 sps:$4 sm:$0xff]   ;;  %v717_v21 = vld [vmem:[%s799_s5 + $0x54] ss:$8 sps:$4 sm:$0xff]  }
  0x12   : > { %439 = vmatprep.mubr.bf16.mxu1 %v714_v12  ;;  %v719_v22 = vld [vmem:[%s799_s5 + $0x10] ss:$8 sps:$4 sm:$0xff]   ;;  %v721_v24 = vld [vmem:[%s799_s5 + $0x24] ss:$8 sps:$4 sm:$0xff]   ;;  %v725_v26 = vld [vmem:[%s799_s5 + $0x20] ss:$8 sps:$4 sm:$0xff]  }
  0x13   : > { %612 = vmatpush3.bf16.msra.mxu0 %v700_v7  ;;  %680 = vmatpush3.bf16.msra.mxu1 %v700_v7  ;;  %v720_v23 = vld [vmem:[%s799_s5 + $0x50] ss:$8 sps:$4 sm:$0xff]   ;;  %v723_v25 = vld [vmem:[%s799_s5 + $0x64] ss:$8 sps:$4 sm:$0xff]   ;;  %v726_v27 = vld [vmem:[%s799_s5 + $0x60] ss:$8 sps:$4 sm:$0xff]  }
  0x14   : > { %613 = vmatprep.subr.bf16.mxu0 %v701_v8  ;;  %673 = vmatprep.subr.bf16.mxu1 %v701_v8  ;;  %v727_v28 = vld [vmem:[%s799_s5 + $0x34] ss:$8 sps:$4 sm:$0xff]   ;;  %v731_v30 = vld [vmem:[%s799_s5 + $0x30] ss:$8 sps:$4 sm:$0xff]  }
  0x15   : > { %v729_v29 = vld [vmem:[%s799_s5 + $0x74] ss:$8 sps:$4 sm:$0xff]   ;;  %v732_v31 = vld [vmem:[%s799_s5 + $0x70] ss:$8 sps:$4 sm:$0xff]  }
  0x17   : > { %614 = vmatpush3.bf16.msra.mxu0 %v702_v9  ;;  %681 = vmatpush3.bf16.msra.mxu1 %v702_v9 }
  0x18   : > { %615 = vmatprep.subr.bf16.mxu0 %v703_v10  ;;  %674 = vmatprep.subr.bf16.mxu1 %v703_v10 }
  0x1b   : > { %616 = vmatpush3.bf16.msra.mxu0 %v704_v13  ;;  %682 = vmatpush3.bf16.msra.mxu1 %v704_v13 }
  0x1c   : > { %617 = vmatprep.subr.bf16.mxu0 %v705_v14  ;;  %675 = vmatprep.subr.bf16.mxu1 %v705_v14 }
  0x1f   : > { %618 = vmatpush3.bf16.msra.mxu0 %v706_v15  ;;  %683 = vmatpush3.bf16.msra.mxu1 %v706_v15 }
  0x20   : > { %619 = vmatprep.subr.bf16.mxu0 %v707_v16  ;;  %676 = vmatprep.subr.bf16.mxu1 %v707_v16 }
  0x23   : > { %620 = vmatpush3.bf16.msra.mxu0 %v708_v17  ;;  %684 = vmatpush3.bf16.msra.mxu1 %v708_v17 }
  0x26   : > { %408 = vmatmul.mubr.bf16.vlgmr.msra.gmra.mrb[0].mxu0 %v709_v18  ;;  %440 = vmatmul.mubr.bf16.vlgmr.msra.gmra.mrb[0].mxu1 %v712_v19 }
  0x27   : > { %415 = vmatprep.mubr.bf16.mxu0 %v715_v20  ;;  %447 = vmatprep.mubr.bf16.mxu1 %v717_v21 }
  0x2e   : > { %416 = vmatmul.mubr.bf16.gmra.mrb[4].mxu0 %v719_v22  ;;  %448 = vmatmul.mubr.bf16.gmra.mrb[4].mxu1 %v720_v23 }
  0x2f   : > { %423 = vmatprep.mubr.bf16.mxu0 %v721_v24  ;;  %455 = vmatprep.mubr.bf16.mxu1 %v723_v25 }
  0x36   : > { %424 = vmatmul.mubr.bf16.gmra.mrb[8].mxu0 %v725_v26  ;;  %456 = vmatmul.mubr.bf16.gmra.mrb[8].mxu1 %v726_v27 }
  0x37   : > { %431 = vmatprep.mubr.bf16.mxu0 %v727_v28  ;;  %463 = vmatprep.mubr.bf16.mxu1 %v729_v29 }
  0x3e   : > { %432 = vmatmul.mubr.bf16.gmra.mrb[12].mxu0 %v731_v30  ;;  %464 = vmatmul.mubr.bf16.gmra.mrb[12].mxu1 %v732_v31 }
  0xf9   : > { %v621_v32 = vpop.f32.mrb[0].mxu0  ;;  %v645_v33 = vpop.f32.mrb[0].mxu1 }
  0xfa   : > { %v622_v34 = vpop.f32.mrb[1].mxu0  ;;  %v646_v35 = vpop.f32.mrb[1].mxu1 }
  0xfb   : > { %v623_v36 = vadd.f32 %v622_v34, %v621_v32  ;;  %v647_v37 = vadd.f32 %v646_v35, %v645_v33  ;;  %v624_v38 = vpop.f32.mrb[2].mxu0  ;;  %v648_v39 = vpop.f32.mrb[2].mxu1 }
  0xfc   : > { %v625_v40 = vpop.f32.mrb[3].mxu0  ;;  %v649_v41 = vpop.f32.mrb[3].mxu1 }
  0xfd   : > { %v472_v42 = vmax.f32 %v623_v36, 0.0  ;;  %v480_v43 = vmax.f32 %v647_v37, 0.0  ;;  %v626_v44 = vadd.f32 %v625_v40, %v624_v38  ;;  %v650_v45 = vadd.f32 %v649_v41, %v648_v39 }
  0xff   : > { %488 = vst [vmem:[%s843_s24] sm:$0xff] %v472_v42  ;;  %496 = vst [vmem:[%s843_s24 + $0x40] sm:$0xff] %v480_v43  ;;  %v473_v46 = vmax.f32 %v626_v44, 0.0  ;;  %v481_v47 = vmax.f32 %v650_v45, 0.0 }
 0x101   : > { %489 = vst [vmem:[%s843_s24 + $0x8] sm:$0xff] %v473_v46  ;;  %497 = vst [vmem:[%s843_s24 + $0x48] sm:$0xff] %v481_v47  ;;  %v627_v48 = vpop.f32.mrb[4].mxu0  ;;  %v651_v49 = vpop.f32.mrb[4].mxu1 }
 0x102   : > { %v628_v50 = vpop.f32.mrb[5].mxu0  ;;  %v652_v51 = vpop.f32.mrb[5].mxu1 }
 0x103   : > { %v629_v52 = vadd.f32 %v628_v50, %v627_v48  ;;  %v653_v53 = vadd.f32 %v652_v51, %v651_v49  ;;  %v630_v54 = vpop.f32.mrb[6].mxu0  ;;  %v654_v55 = vpop.f32.mrb[6].mxu1 }
 0x104   : > { %v631_v56 = vpop.f32.mrb[7].mxu0  ;;  %v655_v57 = vpop.f32.mrb[7].mxu1 }
 0x105   : > { %v474_v58 = vmax.f32 %v629_v52, 0.0  ;;  %v482_v59 = vmax.f32 %v653_v53, 0.0  ;;  %v632_v60 = vadd.f32 %v631_v56, %v630_v54  ;;  %v656_v61 = vadd.f32 %v655_v57, %v654_v55 }
 0x107   : > { %490 = vst [vmem:[%s843_s24 + $0x10] sm:$0xff] %v474_v58  ;;  %498 = vst [vmem:[%s843_s24 + $0x50] sm:$0xff] %v482_v59  ;;  %v475_v62 = vmax.f32 %v632_v60, 0.0  ;;  %v483_v63 = vmax.f32 %v656_v61, 0.0 }
 0x109   : > { %491 = vst [vmem:[%s843_s24 + $0x18] sm:$0xff] %v475_v62  ;;  %499 = vst [vmem:[%s843_s24 + $0x58] sm:$0xff] %v483_v63  ;;  %v633_v0 = vpop.f32.mrb[8].mxu0  ;;  %v657_v1 = vpop.f32.mrb[8].mxu1 }
 0x10a   : > { %v634_v2 = vpop.f32.mrb[9].mxu0  ;;  %v658_v3 = vpop.f32.mrb[9].mxu1 }
 0x10b   : > { %v635_v4 = vadd.f32 %v634_v2, %v633_v0  ;;  %v659_v5 = vadd.f32 %v658_v3, %v657_v1  ;;  %v636_v6 = vpop.f32.mrb[10].mxu0  ;;  %v660_v7 = vpop.f32.mrb[10].mxu1 }
 0x10c   : > { %v637_v8 = vpop.f32.mrb[11].mxu0  ;;  %v661_v9 = vpop.f32.mrb[11].mxu1 }
 0x10d   : > { %v476_v10 = vmax.f32 %v635_v4, 0.0  ;;  %v484_v11 = vmax.f32 %v659_v5, 0.0  ;;  %v638_v12 = vadd.f32 %v637_v8, %v636_v6  ;;  %v662_v13 = vadd.f32 %v661_v9, %v660_v7 }
 0x10f   : > { %492 = vst [vmem:[%s843_s24 + $0x20] sm:$0xff] %v476_v10  ;;  %500 = vst [vmem:[%s843_s24 + $0x60] sm:$0xff] %v484_v11  ;;  %v477_v14 = vmax.f32 %v638_v12, 0.0  ;;  %v485_v15 = vmax.f32 %v662_v13, 0.0 }
 0x111   : > { %493 = vst [vmem:[%s843_s24 + $0x28] sm:$0xff] %v477_v14  ;;  %501 = vst [vmem:[%s843_s24 + $0x68] sm:$0xff] %v485_v15  ;;  %v639_v16 = vpop.f32.mrb[12].mxu0  ;;  %v663_v17 = vpop.f32.mrb[12].mxu1 }
 0x112   : > { %v640_v18 = vpop.f32.mrb[13].mxu0  ;;  %v664_v19 = vpop.f32.mrb[13].mxu1 }
 0x113   : > { %v641_v20 = vadd.f32 %v640_v18, %v639_v16  ;;  %v665_v21 = vadd.f32 %v664_v19, %v663_v17  ;;  %v642_v22 = vpop.f32.mrb[14].mxu0  ;;  %v666_v23 = vpop.f32.mrb[14].mxu1 }
 0x114   : > { %v643_v24 = vpop.f32.mrb[15].mxu0  ;;  %v667_v25 = vpop.f32.mrb[15].mxu1 }
 0x115   : > { %v478_v26 = vmax.f32 %v641_v20, 0.0  ;;  %v486_v27 = vmax.f32 %v665_v21, 0.0  ;;  %v644_v28 = vadd.f32 %v643_v24, %v642_v22  ;;  %v668_v29 = vadd.f32 %v667_v25, %v666_v23 }
 0x117   : > { %494 = vst [vmem:[%s843_s24 + $0x30] sm:$0xff] %v478_v26  ;;  %502 = vst [vmem:[%s843_s24 + $0x70] sm:$0xff] %v486_v27  ;;  %v479_v30 = vmax.f32 %v644_v28, 0.0  ;;  %v487_v31 = vmax.f32 %v668_v29, 0.0 }
 0x119   : > { %495 = vst [vmem:[%s843_s24 + $0x38] sm:$0xff] %v479_v30  ;;  %503 = vst [vmem:[%s843_s24 + $0x78] sm:$0xff] %v487_v31 }
 0x11a PF: > { %s12_s9 = sadd.s32 1, %s739_s9  }
 0x11b   : > { %p9_p4 = scmp.ge.s32.totalorder %s12_s9, 4  }
 0x11d   :  { %11 = sbr.rel (!%p9_p4) target bundleno = 1 (0x1), region = 58 }

</bundles_post_ra>
